<compile_context>
chip_gen: v5e
topology: v5e:2x2
jax: 0.10.0
libtpu: 0.0.40
codegen_flags: <defaults>
</compile_context>

<pallas_src>
import functools

import numpy as np
import jax
import jax.numpy as jnp
from jax import lax
from jax.experimental import pallas as pl
from jax.experimental.pallas import tpu as pltpu

_DELTA = 1e-7                                    # the shadowed delta in forward()
_INV = float(np.log(np.exp(1.0 - _DELTA) - 1.0))
_SELU_ALPHA = 1.6732632423543772848170429916717
_SELU_SCALE = 1.0507009873554804934193349852946


# ----------------------------------------------------------------------------
# small in-kernel math helpers (lower cleanly in Mosaic)
# ----------------------------------------------------------------------------
def _softplus(x):
    # numerically stable softplus
    return jnp.maximum(x, 0.0) + jnp.log(1.0 + jnp.exp(-jnp.abs(x)))


def _selu(x):
    return _SELU_SCALE * jnp.where(x > 0, x, _SELU_ALPHA * (jnp.exp(x) - 1.0))


# ----------------------------------------------------------------------------
# fused DDSF kernel (all DenseSigmoidFlow blocks chained inside one grid step)
# ----------------------------------------------------------------------------
def _make_fused_ddsf_kernel(block_meta):
    """block_meta: tuple of (hidden_dim, in_dim, out_dim) per DSF block.

    Ref layout per grid step (column tile of width TN):
      refs[0]                       : x        (1, TN)
      refs[1 : 1+n]                 : slabs    (3H+in_j, TN)   feature-major dsparams
      next n_eu refs                : exp(u)   (H, in_j)       only for blocks with in_j > 1
      next n refs                   : exp(w)   (out_j, H)  or  (H, 1) when out_j == 1
      last ref                      : output   (1, TN)
    """
    n = len(block_meta)
    n_eu = sum(1 for (_, ind, _) in block_meta if ind > 1)

    def kernel(*refs):
        x_ref = refs[0]
        slab_refs = refs[1:1 + n]
        eu_refs = refs[1 + n:1 + n + n_eu]
        ew_refs = refs[1 + n + n_eu:1 + 2 * n + n_eu]
        o_ref = refs[1 + 2 * n + n_eu]

        dot = functools.partial(jnp.dot, precision=lax.Precision.HIGHEST,
                                preferred_element_type=jnp.float32)

        xi = x_ref[...]                                     # (1, TN)
        eu_idx = 0
        for blk_idx, (H, ind, outd) in enumerate(block_meta):
            slab = slab_refs[blk_idx]
            # NOTE: group offsets 0, H, 2H, 3H are multiples of 8 for the
            # module default hidden_dim=16, so these are free static slices.
            a = _softplus(slab[0:H, :] + _INV)              # (H, TN)
            b = slab[H:2 * H, :]                            # (H, TN)
            c = slab[2 * H:3 * H, :]                        # (H, TN)

            if ind == 1:
                # softmax over the singleton in_dim is identically 1 -> u @ x == x
                ux = xi                                     # (1, TN)
            else:
                d = slab[3 * H:3 * H + ind, :]              # (in, TN)
                dmax = jnp.max(d, axis=0, keepdims=True)    # (1, TN)
                ed = jnp.exp(d - dmax)                      # (in, TN)
                eu = eu_refs[eu_idx][...]                   # (H, in) = exp(u - max_i u)
                eu_idx += 1
                se = dot(eu, ed)                            # (H, TN)  softmax denom
                sex = dot(eu, ed * xi)                      # (H, TN)  softmax num @ x
                ux = sex / se                               # exact softmax(u+d) @ x

            sigm = _selu(a * ux + b)                        # (H, TN)

            cmax = jnp.max(c, axis=0, keepdims=True)        # (1, TN)
            ec = jnp.exp(c - cmax)                          # (H, TN)
            ew = ew_refs[blk_idx][...]
            if outd == 1:
                # ew is (H, 1): lane-broadcast multiply + sublane reduction
                num = jnp.sum(ew * ec * sigm, axis=0, keepdims=True)   # (1, TN)
                den = jnp.sum(ew * ec, axis=0, keepdims=True)          # (1, TN)
            else:
                num = dot(ew, ec * sigm)                    # (out, TN)
                den = dot(ew, ec)                           # (out, TN)
            xi = num / den                                  # exact softmax(w+c) @ sigm

        o_ref[...] = xi.astype(o_ref.dtype)

    return kernel


# ----------------------------------------------------------------------------
# DDSF module: params + forward
# ----------------------------------------------------------------------------
def init_ddsf_params(key, n_blocks=1, hidden_dim=16):
    """Deterministic init matching DDSF.__init__ / reset_parameters shapes."""
    if n_blocks == 1:
        dims = [(hidden_dim, 1, 1)]
    else:
        dims = [(hidden_dim, 1, hidden_dim)]
        dims += [(hidden_dim, hidden_dim, hidden_dim)] * (n_blocks - 2)
        dims += [(hidden_dim, hidden_dim, 1)]
    params = []
    for (H, in_dim, out_dim) in dims:
        key, k1, k2 = jax.random.split(key, 3)
        u_ = jax.random.uniform(k1, (H, in_dim), minval=-0.001, maxval=0.001,
                                dtype=jnp.float32)
        w_ = jax.random.uniform(k2, (out_dim, H), minval=-0.001, maxval=0.001,
                                dtype=jnp.float32)
        params.append(dict(u=u_, w=w_, hidden_dim=H, in_dim=in_dim,
                           out_dim=out_dim, num_params=3 * H + in_dim))
    return params


def ddsf_forward(x, dsparams, params, *, tile_cols=8192):
    """DDSF.forward: x (B, D), dsparams (B, D, sum(num_params)) -> (B, D)."""
    B, D = x.shape
    N = B * D
    total = sum(p["num_params"] for p in params)

    ds = dsparams.reshape(N, total)
    x_fm = x.reshape(1, N).astype(jnp.float32)

    # per-block feature-major parameter slabs + tiny precomputed softmax factors
    slabs, eus, ews, meta = [], [], [], []
    start = 0
    for p in params:
        H, ind, outd = p["hidden_dim"], p["in_dim"], p["out_dim"]
        npar = p["num_params"]
        slabs.append(ds[:, start:start + npar].T.astype(jnp.float32))   # (npar, N)
        if ind > 1:
            u = p["u"].astype(jnp.float32)
            eus.append(jnp.exp(u - jnp.max(u, axis=1, keepdims=True)))  # (H, in)
        w = p["w"].astype(jnp.float32)
        ew = jnp.exp(w - jnp.max(w, axis=1, keepdims=True))             # (out, H)
        ews.append(ew.T if outd == 1 else ew)                           # (H,1) / (out,H)
        meta.append((H, ind, outd))
        start += npar

    # Column tile: lane-dense and as large as a conservative per-step VMEM
    # budget allows (double-buffered inputs <= ~12 MiB keeps headroom even on
    # v7x's 64 MiB / 32 MiB-scoped VMEM).
    rows = total + 2                      # slabs + x + out, f32
    budget_bytes = 12 * 1024 * 1024
    max_tn = max(128, budget_bytes // (2 * 4 * rows))
    if N <= tile_cols and N <= max_tn:
        TN, num_tiles = N, 1              # single full-extent block, no padding
    else:
        TN = max(128, (min(tile_cols, max_tn) // 128) * 128)
        num_tiles = pl.cdiv(N, TN)        # last block may be partial (masked stores)

    def col(r):
        return pl.BlockSpec((r, TN), lambda i: (0, i))

    def full(shape):
        return pl.BlockSpec(shape, lambda i: (0, 0))

    in_specs = [col(1)]
    in_specs += [col(s.shape[0]) for s in slabs]
    in_specs += [full(e.shape) for e in eus]
    in_specs += [full(e.shape) for e in ews]

    flops = 0
    trans = 0
    for (H, ind, outd) in meta:
        flops += N * (4 * H * ind + 4 * H * outd + 14 * H)
        trans += N * (3 * H + ind)
    cost = pl.CostEstimate(flops=int(flops), transcendentals=int(trans),
                           bytes_accessed=int(4 * N * rows))

    out = pl.pallas_call(
        _make_fused_ddsf_kernel(tuple(meta)),
        out_shape=jax.ShapeDtypeStruct((1, N), jnp.float32),
        grid_spec=pltpu.PrefetchScalarGridSpec(
            num_scalar_prefetch=0,
            grid=(num_tiles,),
            in_specs=in_specs,
            out_specs=col(1)),
        compiler_params=pltpu.CompilerParams(
            dimension_semantics=("parallel",),
            vmem_limit_bytes=48 * 1024 * 1024),
        cost_estimate=cost,
    )(x_fm, *slabs, *eus, *ews)
    return out.reshape(B, D)


def ddsf_reference(x, dsparams, params):
    """Pure-JAX port of the PyTorch forward, for verification."""
    xi = x[:, :, None]
    start = 0
    for p in params:
        H, in_dim = p["hidden_dim"], p["in_dim"]
        ds = dsparams[:, :, start:start + p["num_params"]]
        inv = np.log(np.exp(1.0 - _DELTA) - 1.0)
        pre_u = p["u"][None, None] + ds[:, :, -in_dim:][:, :, None, :]
        pre_w = p["w"][None, None] + ds[:, :, 2 * H:3 * H][:, :, None, :]
        a = jax.nn.softplus(ds[:, :, 0:H] + inv)
        b = ds[:, :, H:2 * H]
        w = jax.nn.softmax(pre_w, axis=3)
        u = jax.nn.softmax(pre_u, axis=3)
        pre_sigm = jnp.sum(u * a[:, :, :, None] * xi[:, :, None, :], axis=3) + b
        sigm = jax.nn.selu(pre_sigm)
        xi = jnp.sum(w * sigm[:, :, None, :], axis=3)
        start += p["num_params"]
    return xi[:, :, 0]


if __name__ == "__main__":
    key = jax.random.PRNGKey(0)
    B, D, H = 2, 8, 16                         # small shapes; DDSF default hidden=16
    kx, kd, kp, k2 = jax.random.split(key, 4)

    RTOL, ATOL = 2e-3, 1e-4                    # exact divisions -> comfortable margin

    # --- DDSF(n_blocks=1, hidden_dim=16): the module default ---------------
    params = init_ddsf_params(kp, n_blocks=1, hidden_dim=H)
    total = sum(p["num_params"] for p in params)          # 3*16 + 1 = 49
    x = jax.random.normal(kx, (B, D), dtype=jnp.float32)
    dsparams = 0.1 * jax.random.normal(kd, (B, D, total), dtype=jnp.float32)

    out = jax.block_until_ready(ddsf_forward(x, dsparams, params))
    ref = jax.block_until_ready(ddsf_reference(x, dsparams, params))
    np.testing.assert_allclose(np.asarray(out), np.asarray(ref),
                               rtol=RTOL, atol=ATOL)

    # --- DDSF(n_blocks=3): exercises the general in_dim/out_dim path -------
    params3 = init_ddsf_params(k2, n_blocks=3, hidden_dim=H)
    total3 = sum(p["num_params"] for p in params3)        # 49 + 64 + 64 = 177
    kd2, kx2 = jax.random.split(k2)
    x3 = jax.random.normal(kx2, (B, D), dtype=jnp.float32)
    ds3 = 0.1 * jax.random.normal(kd2, (B, D, total3), dtype=jnp.float32)

    out3 = jax.block_until_ready(ddsf_forward(x3, ds3, params3))
    ref3 = jax.block_until_ready(ddsf_reference(x3, ds3, params3))
    np.testing.assert_allclose(np.asarray(out3), np.asarray(ref3),
                               rtol=RTOL, atol=ATOL)

    print("KERNEL_OK")
</pallas_src>

<mosaic_0001>
module attributes {stable_mosaic.version = 11 : i64} {
  func.func @kernel(%arg0: i32, %arg1: memref<1x16xf32, #tpu.memory_space<vmem>>, %arg2: memref<49x16xf32, #tpu.memory_space<vmem>>, %arg3: memref<16x1xf32, #tpu.memory_space<vmem>>, %arg4: memref<1x16xf32, #tpu.memory_space<vmem>>) attributes {dimension_semantics = [#tpu.dimension_semantics<parallel>], iteration_bounds = array<i64: 1>, scalar_prefetch = 0 : i64, scratch_operands = 0 : i64, tpu.core_type = #tpu.core_type<tc>, window_params = [{transform_indices = @transform_0, window_bounds = array<i64: 1, 16>}, {transform_indices = @transform_1, window_bounds = array<i64: 49, 16>}, {pipeline_mode = #tpu.pipeline_mode<synchronous>, transform_indices = @transform_2, window_bounds = array<i64: 16, 1>}, {transform_indices = @transform_3, window_bounds = array<i64: 1, 16>}]} {
    %c0 = arith.constant 0 : index
    %c0_0 = arith.constant 0 : index
    %0 = vector.load %arg1[%c0, %c0_0] : memref<1x16xf32, #tpu.memory_space<vmem>>, vector<1x16xf32>
    %c0_1 = arith.constant 0 : index
    %c0_2 = arith.constant 0 : index
    %1 = vector.load %arg2[%c0_1, %c0_2] : memref<49x16xf32, #tpu.memory_space<vmem>>, vector<16x16xf32>
    %cst = arith.constant 0.541324675 : f32
    %2 = vector.broadcast %cst : f32 to vector<16x16xf32>
    %3 = arith.addf %1, %2 : vector<16x16xf32>
    %cst_3 = arith.constant 0.000000e+00 : f32
    %4 = vector.broadcast %cst_3 : f32 to vector<16x16xf32>
    %5 = arith.maximumf %3, %4 : vector<16x16xf32>
    %6 = math.absf %3 : vector<16x16xf32>
    %cst_4 = arith.constant 0.000000e+00 : f32
    %7 = vector.broadcast %cst_4 : f32 to vector<16x16xf32>
    %8 = arith.subf %7, %6 : vector<16x16xf32>
    %9 = math.exp %8 : vector<16x16xf32>
    %cst_5 = arith.constant 1.000000e+00 : f32
    %10 = vector.broadcast %cst_5 : f32 to vector<16x16xf32>
    %11 = arith.addf %10, %9 : vector<16x16xf32>
    %12 = math.log %11 : vector<16x16xf32>
    %13 = arith.addf %5, %12 : vector<16x16xf32>
    %c16 = arith.constant 16 : index
    %c0_6 = arith.constant 0 : index
    %14 = vector.load %arg2[%c16, %c0_6] : memref<49x16xf32, #tpu.memory_space<vmem>>, vector<16x16xf32>
    %c32 = arith.constant 32 : index
    %c0_7 = arith.constant 0 : index
    %15 = vector.load %arg2[%c32, %c0_7] : memref<49x16xf32, #tpu.memory_space<vmem>>, vector<16x16xf32>
    %16 = vector.broadcast %0 : vector<1x16xf32> to vector<16x16xf32>
    %17 = arith.mulf %13, %16 : vector<16x16xf32>
    %18 = arith.addf %17, %14 : vector<16x16xf32>
    %cst_8 = arith.constant 0.000000e+00 : f32
    %19 = vector.broadcast %cst_8 : f32 to vector<16x16xf32>
    %20 = arith.cmpf ogt, %18, %19 : vector<16x16xf32>
    %21 = math.exp %18 : vector<16x16xf32>
    %cst_9 = arith.constant 1.000000e+00 : f32
    %22 = vector.broadcast %cst_9 : f32 to vector<16x16xf32>
    %23 = arith.subf %21, %22 : vector<16x16xf32>
    %cst_10 = arith.constant 1.67326319 : f32
    %24 = vector.broadcast %cst_10 : f32 to vector<16x16xf32>
    %25 = arith.mulf %24, %23 : vector<16x16xf32>
    %26 = arith.select %20, %18, %25 : vector<16x16xi1>, vector<16x16xf32>
    %cst_11 = arith.constant 1.05070102 : f32
    %27 = vector.broadcast %cst_11 : f32 to vector<16x16xf32>
    %28 = arith.mulf %27, %26 : vector<16x16xf32>
    %cst_12 = arith.constant dense<0xFF800000> : vector<16xf32>
    %29 = vector.multi_reduction <maximumf>, %15, %cst_12 [0] : vector<16x16xf32> to vector<16xf32>
    %30 = vector.shape_cast %29 : vector<16xf32> to vector<1x16xf32>
    %31 = vector.broadcast %30 : vector<1x16xf32> to vector<16x16xf32>
    %32 = arith.subf %15, %31 : vector<16x16xf32>
    %33 = math.exp %32 : vector<16x16xf32>
    %c0_13 = arith.constant 0 : index
    %c0_14 = arith.constant 0 : index
    %34 = vector.load %arg3[%c0_13, %c0_14] : memref<16x1xf32, #tpu.memory_space<vmem>>, vector<16x1xf32>
    %35 = vector.broadcast %34 : vector<16x1xf32> to vector<16x16xf32>
    %36 = arith.mulf %35, %33 : vector<16x16xf32>
    %37 = arith.mulf %36, %28 : vector<16x16xf32>
    %cst_15 = arith.constant dense<0.000000e+00> : vector<16xf32>
    %38 = vector.multi_reduction <add>, %37, %cst_15 [0] : vector<16x16xf32> to vector<16xf32>
    %39 = vector.shape_cast %38 : vector<16xf32> to vector<1x16xf32>
    %40 = vector.broadcast %34 : vector<16x1xf32> to vector<16x16xf32>
    %41 = arith.mulf %40, %33 : vector<16x16xf32>
    %cst_16 = arith.constant dense<0.000000e+00> : vector<16xf32>
    %42 = vector.multi_reduction <add>, %41, %cst_16 [0] : vector<16x16xf32> to vector<16xf32>
    %43 = vector.shape_cast %42 : vector<16xf32> to vector<1x16xf32>
    %44 = arith.divf %39, %43 : vector<1x16xf32>
    %c0_17 = arith.constant 0 : index
    %c0_18 = arith.constant 0 : index
    %45 = vector.load %arg4[%c0_17, %c0_18] : memref<1x16xf32, #tpu.memory_space<vmem>>, vector<1x16xf32>
    tpu.vector_store %arg4[%c0_17, %c0_18], %44 {strides = array<i32>} : memref<1x16xf32, #tpu.memory_space<vmem>>, vector<1x16xf32>,
    return
  }
  func.func @transform_0(%arg0: i32) -> (i32, i32) {
    %c0_i32 = arith.constant 0 : i32
    %c0_i32_0 = arith.constant 0 : i32
    return %c0_i32, %arg0 : i32, i32
  }
  func.func @transform_1(%arg0: i32) -> (i32, i32) {
    %c0_i32 = arith.constant 0 : i32
    %c0_i32_0 = arith.constant 0 : i32
    return %c0_i32, %arg0 : i32, i32
  }
  func.func @transform_2(%arg0: i32) -> (i32, i32) {
    %c0_i32 = arith.constant 0 : i32
    %c0_i32_0 = arith.constant 0 : i32
    %c0_i32_1 = arith.constant 0 : i32
    return %c0_i32, %c0_i32_0 : i32, i32
  }
  func.func @transform_3(%arg0: i32) -> (i32, i32) {
    %c0_i32 = arith.constant 0 : i32
    %c0_i32_0 = arith.constant 0 : i32
    return %c0_i32, %arg0 : i32, i32
  }
}

</mosaic_0001>

<bundles_post_ra>
// kernel: tpu_custom_call.1
= control target key start
LH: loop header
LB: loop body
LE: loop exit
PB: predicated region body
PF: predicated region fallthrough
CT: control target
= control target key end

     0   :  { %v196_v1 = vmov 0   ;;  %s254_s0 = inlined_call_operand.vmem [shape: f32[1,16], index: 0, kind: input, shape index: {}]   ;;  %s255_s1 = inlined_call_operand.vmem [shape: f32[49,16], index: 1, kind: input, shape index: {}]   ;;  %s256_s2 = inlined_call_operand.vmem [shape: f32[16,1], index: 2, kind: input, shape index: {}]   ;;  %s257_s3 = inlined_call_operand.hbm [shape: f32[1,16], index: 3, kind: output, shape index: {}]  }
   0x1   :  { %v79_v0 = vld [vmem:[%s256_s2] sm:$0xff]  ;;  %150 = vset.pattern.permute.xlu0 %v196_v1 }
   0x2   :  { %8 = vsyncpa [#allocation3], 0  ;;  %83 = vperm.xlu0 %150, %v79_v0   ;;  %v80_v2 = vld [vmem:[%s256_s2 + $0x8] sm:$0xff]  ;;  %v16_v3 = vld [vmem:[%s255_s1] sm:$0xff]  ;;  %vm63_vm0 = vcmask 130048   ;;  %s137_s4 = sshll.u32 %s257_s3, 4  ;;  %s138_s4 = int_to_ptr.hbm [resolvable:$true] %s137_s4 }
   0x3   :  { %v18_v4 = vadd.f32 0.5413247, %v16_v3  ;;  %v17_v5 = vld [vmem:[%s255_s1 + $0x8] sm:$0xff]  ;;  %v40_v17 = vld [vmem:[%s255_s1 + $0x20] sm:$0xff]  ;;  %v39_v36 = vld [vmem:[%s255_s1 + $0x18] sm:$0xff]  ;;  %vm128_vm7 = vcmask 122880  }
   0x4   :  { %v19_v6 = vadd.f32 0.5413247, %v17_v5  ;;  %v41_v18 = vld [vmem:[%s255_s1 + $0x28] sm:$0xff]  ;;  %v64_v19 = vsel %vm63_vm0, %v40_v17, -inf  ;;  %v151_v32 = vld [vmem:[%s254_s0] ss:$0 sm:$0xff] }
   0x5   :  { %v22_v8 = vand.u32 2147483647, %v18_v4  ;;  %v65_v20 = vsel %vm63_vm0, %v41_v18, -inf  ;;  %v20_v27 = vmax.f32 %v18_v4, 0.0  ;;  %v38_v37 = vld [vmem:[%s255_s1 + $0x10] sm:$0xff]  ;;  %s197_s0 = smov [#allocation2]  }
   0x6   :  { %v23_v7 = vand.u32 2147483647, %v19_v6  ;;  %v66_v21 = vmax.f32 %v64_v19, %v65_v20  ;;  %v21_v25 = vmax.f32 %v19_v6, 0.0  ;;  %s135_s1 = sshll.u32 %s197_s0, 4  ;;  %s136_s1 = int_to_ptr.vmem [resolvable:$true] %s135_s1 }
   0x7   :  { %v24_v10 = vsub.f32 0.0, %v22_v8 }
   0x8   :  { %v25_v9 = vsub.f32 0.0, %v23_v7  ;;  %v67_v24 = vrot.slane %v66_v21, 4 }
   0x9   :  { %v26_v12 = vmul.f32 1.442695, %v24_v10 }
   0xa   :  { %88 = vperm.xlu0 %150, %v80_v2   ;;  %v28_v11 = vmul.f32 1.442695, %v25_v9  ;;  %v68_v29 = vmax.f32 %v66_v21, %v67_v24 }
   0xc   :  { %152 = vpow2.f32 %v28_v11  ;;  %v69_v33 = vrot.slane %v68_v29, 2 }
   0xd   :  { %154 = vpow2.f32 %v26_v12 }
   0xe   :  { %v70_v38 = vmax.f32 %v68_v29, %v69_v33 }
  0x10   :  { %v71_v41 = vrot.slane %v70_v38, 1 }
  0x12   :  { %v153_v13 = vpop.eup %152  ;;  %v72_v44 = vmax.f32 %v70_v38, %v71_v41 }
  0x13   :  { %v155_v14 = vpop.eup %154  ;;  %v31_v15 = vadd.f32 1.0, %v153_v13 }
  0x14   :  { %v30_v16 = vadd.f32 1.0, %v155_v14  ;;  %v73_v45 = vsub.f32 %v40_v17, %v72_v44  ;;  %v74_v46 = vsub.f32 %v41_v18, %v72_v44 }
  0x15   :  { %156 = vlog2.f32 %v31_v15 }
  0x16   :  { %158 = vlog2.f32 %v30_v16  ;;  %v75_v49 = vmul.f32 1.442695, %v73_v45  ;;  %v77_v51 = vmul.f32 1.442695, %v74_v46 }
  0x1b   :  { %v157_v22 = vpop.eup %156 }
  0x1c   :  { %v159_v23 = vpop.eup %158  ;;  %v35_v26 = vmul.f32 0.6931472, %v157_v22 }
  0x1d   :  { %v33_v28 = vmul.f32 0.6931472, %v159_v23 }
  0x1e   :  { %v37_v30 = vadd.f32 %v35_v26, %v21_v25 }
  0x1f   :  { %v36_v31 = vadd.f32 %v33_v28, %v20_v27 }
  0x20   :  { %v46_v34 = vmul.f32 %v151_v32, %v37_v30 }
  0x21   :  { %v45_v35 = vmul.f32 %v151_v32, %v36_v31 }
  0x22   :  { %v48_v39 = vadd.f32 %v46_v34, %v39_v36 }
  0x23   :  { %v47_v40 = vadd.f32 %v45_v35, %v38_v37 }
  0x24   :  { %v53_v42 = vmul.f32 1.442695, %v48_v39  ;;  %vm50_vm1 = vcmp.gt.f32.partialorder %v48_v39, 0.0 }
  0x25   :  { %v51_v43 = vmul.f32 1.442695, %v47_v40  ;;  %vm49_vm2 = vcmp.gt.f32.partialorder %v47_v40, 0.0 }
  0x26   :  { %160 = vpow2.f32 %v53_v42 }
  0x27   :  { %162 = vpow2.f32 %v51_v43 }
  0x28   :  { %164 = vpow2.f32 %v75_v49 }
  0x29   :  { %166 = vpow2.f32 %v77_v51 }
  0x2c   :  { %v161_v47 = vpop.eup %160 }
  0x2d   :  { %v163_v48 = vpop.eup %162  ;;  %v147_v50 = vadd.f32 -1.0, %v161_v47 }
  0x2e   :  { %v146_v52 = vadd.f32 -1.0, %v163_v48  ;;  %v165_v56 = vpop.eup %164 }
  0x2f   :  { %v58_v54 = vmul.f32 1.6732632, %v147_v50  ;;  %v167_v59 = vpop.eup %166 }
  0x30   :  { %v57_v55 = vmul.f32 1.6732632, %v146_v52 }
  0x31   :  { %v60_v57 = vsel %vm50_vm1, %v48_v39, %v58_v54 }
  0x32   :  { %v59_v58 = vsel %vm49_vm2, %v47_v40, %v57_v55  ;;  %v62_v61 = vmul.f32 1.050701, %v60_v57 }
  0x33   :  { %v61_v62 = vmul.f32 1.050701, %v59_v58 }
  0x74   :  { %v84_v53 = vpop.permute.xlu0 %83 }
  0x75   :  { %v91_v60 = vmul.f32 %v165_v56, %v84_v53 }
  0x77   :  { %v104_v1 = vsel %vm63_vm0, %v91_v60, 0.0  ;;  %v93_v4 = vmul.f32 %v91_v60, %v61_v62 }
  0x79   :  { %v95_v8 = vsel %vm63_vm0, %v93_v4, 0.0 }
  0x7c   :  { %v89_v63 = vpop.permute.xlu0 %88 }
  0x7d   :  { %v92_v0 = vmul.f32 %v167_v59, %v89_v63 }
  0x7f   :  { %v94_v2 = vmul.f32 %v92_v0, %v62_v61  ;;  %v105_v3 = vsel %vm63_vm0, %v92_v0, 0.0 }
  0x80   :  { %v106_v5 = vadd.f32 %v105_v3, %v104_v1 }
  0x81   :  { %v96_v6 = vsel %vm63_vm0, %v94_v2, 0.0 }
  0x82   :  { %v107_v7 = vrot.slane %v106_v5, 4  ;;  %v97_v10 = vadd.f32 %v96_v6, %v95_v8 }
  0x84   :  { %v108_v9 = vadd.f32 %v107_v7, %v106_v5  ;;  %v98_v13 = vrot.slane %v97_v10, 4 }
  0x86   :  { %v109_v11 = vrot.slane %v108_v9, 2  ;;  %v99_v16 = vadd.f32 %v98_v13, %v97_v10 }
  0x88   :  { %v110_v12 = vadd.f32 %v109_v11, %v108_v9  ;;  %v100_v17 = vrot.slane %v99_v16, 2 }
  0x8a   :  { %v111_v14 = vrot.slane %v110_v12, 1  ;;  %v101_v19 = vadd.f32 %v100_v17, %v99_v16 }
  0x8c   :  { %v112_v15 = vadd.f32 %v111_v14, %v110_v12  ;;  %v102_v23 = vrot.slane %v101_v19, 1 }
  0x8e   :  { %168 = vrcp.f32 %v112_v15  ;;  %v124_v22 = vand.u32 2147483648, %v112_v15  ;;  %v122_v25 = vand.u32 2147483647, %v112_v15  ;;  %vm118_vm4 = vweird.f32 %v112_v15 }
  0x8f   :  { %v103_v28 = vadd.f32 %v102_v23, %v101_v19 }
  0x90   :  { %v125_v27 = vor.u32 1.1754944e-38, %v124_v22  ;;  %vm123_vm6 = vcmp.eq.f32.partialorder %v122_v25, 8.507059e+37 }
  0x94   :  { %v169_v18 = vpop.eup %168 }
  0x95   :  { %v114_v20 = vmul.f32 %v169_v18, %v112_v15  ;;  %vm119_vm3 = vweird.f32 %v169_v18 }
  0x96   :  { %vm120_vm5 = vmor %vm118_vm4, %vm119_vm3 }
  0x97   :  { %v115_v21 = vsub.f32 1.0, %v114_v20 }
  0x99   :  { %v116_v24 = vmul.f32 %v169_v18, %v115_v21 }
  0x9b   :  { %v117_v26 = vadd.f32 %v169_v18, %v116_v24 }
  0x9d   :  { %v121_v29 = vsel %vm120_vm5, %v169_v18, %v117_v26 }
  0x9e   :  { %v126_v30 = vsel %vm123_vm6, %v125_v27, %v121_v29 }
  0x9f   :  { %v127_v31 = vmul.f32 %v126_v30, %v103_v28 }
  0xa1   :  { %129 = vst.msk [vmem:[#allocation2] sm:$0x1] %vm128_vm7, %v127_v31 }
  0xa2   :  { %140 = dma.vmem_to_hbm [thread:$0]  %s136_s1, 16, %s138_s4, [#allocation3]  }
  0xa3   :  { %194 = dma.done.wait [#allocation3], 16  }
  0xa4   :  { %195 = vsyncadd [#allocation3], 4294967280 }
  0xa5   :  { %145 = vsyncpa [#allocation3], 1 }

</bundles_post_ra>
